<compile_context>
chip_gen: v6e
topology: v6e:2x2x1
jax: 0.10.0
libtpu: 0.0.40
codegen_flags: <defaults>
</compile_context>

<pallas_src>
import functools

import jax
import jax.numpy as jnp
from jax import lax
from jax.experimental import pallas as pl
from jax.experimental.pallas import tpu as pltpu


def _residual_block_kernel(x_ref, w1_ref, b1_ref, w2_ref, b2_ref, o_ref, *,
                           nb, C, H, W):
    """One batch-block (nb images) per grid step.

    x_ref  : (nb, C, H*W)   input images, spatial flattened onto lanes
    w1_ref : (C, 9*C)       conv1 weights, K ordered (kh, kw, cin)
    b1_ref : (C, 1)         conv1 bias
    w2_ref : (C, 9*C)       conv2 weights
    b2_ref : (C, 1)         conv2 bias
    o_ref  : (nb, C, H*W)   output
    """
    L = H * W
    f32 = jnp.float32

    # Column-validity masks for horizontal taps (shared by all rows / images).
    col = jax.lax.broadcasted_iota(jnp.int32, (1, L), 1) % W
    ok_left = col >= 1          # tap reads the neighbour at w-1
    ok_right = col <= W - 2     # tap reads the neighbour at w+1

    def im2col(img):
        """img: (C, L) -> (9*C, L) patch matrix; zero-padded 3x3 neighbourhood."""
        taps = []
        for oh in (-1, 0, 1):
            for ow in (-1, 0, 1):
                s = oh * W + ow
                if s == 0:
                    shifted = img
                elif s > 0:
                    shifted = jnp.concatenate(
                        [img[:, s:], jnp.zeros((C, s), f32)], axis=1)
                else:
                    shifted = jnp.concatenate(
                        [jnp.zeros((C, -s), f32), img[:, :L + s]], axis=1)
                # Row (vertical) out-of-range taps are already zero-filled by
                # the shift; only the horizontal wrap needs masking.
                if ow == -1:
                    shifted = jnp.where(ok_left, shifted, 0.0)
                elif ow == 1:
                    shifted = jnp.where(ok_right, shifted, 0.0)
                taps.append(shifted)
        return jnp.concatenate(taps, axis=0)            # (9*C, L)

    x_imgs = [x_ref[n].astype(f32) for n in range(nb)]

    # ---- conv1 + bias + relu : single matmul over all nb images -----------
    p1 = jnp.concatenate([im2col(x) for x in x_imgs], axis=1)   # (9C, nb*L)
    y1 = jnp.dot(w1_ref[...], p1, preferred_element_type=f32) + b1_ref[...]
    y1 = jnp.maximum(y1, 0.0)                                    # (C, nb*L)

    # ---- conv2 + bias ------------------------------------------------------
    p2 = jnp.concatenate(
        [im2col(y1[:, n * L:(n + 1) * L]) for n in range(nb)], axis=1)
    y2 = jnp.dot(w2_ref[...], p2, preferred_element_type=f32) + b2_ref[...]

    # ---- residual add + relu, lane-dense stores ----------------------------
    for n in range(nb):
        out_n = jnp.maximum(x_imgs[n] + y2[:, n * L:(n + 1) * L], 0.0)
        o_ref[n] = out_n.astype(o_ref.dtype)


def _pick_batch_block(n):
    """Images per grid step: amortize the ~0.35us/step overhead, but keep
    >= 2 grid blocks whenever possible so both v7x TensorCores get work."""
    for nb in (8, 4, 2, 1):
        if n % nb == 0 and n // nb >= 2:
            return nb
    return n   # n == 1 (or no split with >=2 steps): single step


def residual_block(x_nchw, w1, b1, w2, b2):
    """x_nchw: (N, C, H, W) float32.  Weights in PyTorch layout (Cout, Cin, 3, 3)."""
    N, C, H, W = x_nchw.shape
    L = H * W
    nb = _pick_batch_block(N)
    grid = N // nb

    # Free reshapes only (no transpose, no pad, no extra HBM pass).
    x_flat = x_nchw.reshape(N, C, L)

    # (Cout, Cin, kh, kw) -> (Cout, kh, kw, Cin) -> (Cout, 9*Cin); K-order
    # matches the im2col tap ordering (kh, kw, cin).  Tiny one-time reshape.
    w1_k = jnp.transpose(w1, (0, 2, 3, 1)).reshape(C, 9 * C)
    w2_k = jnp.transpose(w2, (0, 2, 3, 1)).reshape(C, 9 * C)
    b1_k = b1.reshape(C, 1)
    b2_k = b2.reshape(C, 1)

    kernel = functools.partial(_residual_block_kernel, nb=nb, C=C, H=H, W=W)

    out_flat = pl.pallas_call(
        kernel,
        out_shape=jax.ShapeDtypeStruct((N, C, L), x_nchw.dtype),
        grid_spec=pltpu.PrefetchScalarGridSpec(
            num_scalar_prefetch=0,
            grid=(grid,),
            in_specs=[
                pl.BlockSpec((nb, C, L), lambda n: (n, 0, 0)),
                pl.BlockSpec((C, 9 * C), lambda n: (0, 0)),   # resident weights
                pl.BlockSpec((C, 1), lambda n: (0, 0)),
                pl.BlockSpec((C, 9 * C), lambda n: (0, 0)),
                pl.BlockSpec((C, 1), lambda n: (0, 0)),
            ],
            out_specs=pl.BlockSpec((nb, C, L), lambda n: (n, 0, 0)),
        ),
        compiler_params=pltpu.CompilerParams(
            dimension_semantics=("parallel",),
            # Explicit, conservative VMEM budget: safe on v7x's 64 MiB physical
            # and far above what these blocks need.
            vmem_limit_bytes=32 * 1024 * 1024),
    )(x_flat, w1_k, b1_k, w2_k, b2_k)

    return out_flat.reshape(N, C, H, W)


def _reference(x_nchw, w1, b1, w2, b2):
    """Pure-JAX reference (lax.conv) mirroring the PyTorch forward."""
    dn = lax.conv_dimension_numbers(x_nchw.shape, w1.shape,
                                    ("NCHW", "OIHW", "NCHW"))
    y = lax.conv_general_dilated(x_nchw, w1, (1, 1), ((1, 1), (1, 1)),
                                 dimension_numbers=dn)
    y = jnp.maximum(y + b1[None, :, None, None], 0.0)
    y = lax.conv_general_dilated(y, w2, (1, 1), ((1, 1), (1, 1)),
                                 dimension_numbers=dn)
    y = y + b2[None, :, None, None]
    return jnp.maximum(x_nchw + y, 0.0)


if __name__ == "__main__":
    N, C, H, W = 2, 4, 16, 16
    key = jax.random.PRNGKey(0)
    k_x, k_w1, k_b1, k_w2, k_b2 = jax.random.split(key, 5)

    # Deterministic parameter init (PyTorch-style uniform +-1/sqrt(fan_in))
    fan_in = C * 3 * 3
    bound = 1.0 / (fan_in ** 0.5)
    x = jax.random.normal(k_x, (N, C, H, W), jnp.float32)
    w1 = jax.random.uniform(k_w1, (C, C, 3, 3), jnp.float32, -bound, bound)
    b1 = jax.random.uniform(k_b1, (C,), jnp.float32, -bound, bound)
    w2 = jax.random.uniform(k_w2, (C, C, 3, 3), jnp.float32, -bound, bound)
    b2 = jax.random.uniform(k_b2, (C,), jnp.float32, -bound, bound)

    out = residual_block(x, w1, b1, w2, b2)
    out = jax.block_until_ready(out)

    ref = jax.block_until_ready(_reference(x, w1, b1, w2, b2))
    assert out.shape == (N, C, H, W)
    assert jnp.allclose(out, ref, atol=1e-4, rtol=1e-4)

    print("KERNEL_OK")
</pallas_src>

<mosaic_0001>
module attributes {stable_mosaic.version = 11 : i64} {
  func.func @_residual_block_kernel(%arg0: i32, %arg1: memref<1x4x256xf32, #tpu.memory_space<vmem>>, %arg2: memref<4x36xf32, #tpu.memory_space<vmem>>, %arg3: memref<4x1xf32, #tpu.memory_space<vmem>>, %arg4: memref<4x36xf32, #tpu.memory_space<vmem>>, %arg5: memref<4x1xf32, #tpu.memory_space<vmem>>, %arg6: memref<1x4x256xf32, #tpu.memory_space<vmem>>) attributes {dimension_semantics = [#tpu.dimension_semantics<parallel>], iteration_bounds = array<i64: 2>, scalar_prefetch = 0 : i64, scratch_operands = 0 : i64, tpu.core_type = #tpu.core_type<tc>, window_params = [{transform_indices = @transform_0, window_bounds = array<i64: 1, 4, 256>}, {pipeline_mode = #tpu.pipeline_mode<synchronous>, transform_indices = @transform_1, window_bounds = array<i64: 4, 36>}, {pipeline_mode = #tpu.pipeline_mode<synchronous>, transform_indices = @transform_2, window_bounds = array<i64: 4, 1>}, {pipeline_mode = #tpu.pipeline_mode<synchronous>, transform_indices = @transform_3, window_bounds = array<i64: 4, 36>}, {pipeline_mode = #tpu.pipeline_mode<synchronous>, transform_indices = @transform_4, window_bounds = array<i64: 4, 1>}, {transform_indices = @transform_5, window_bounds = array<i64: 1, 4, 256>}]} {
    %0 = tpu.iota {dimensions = array<i32: 1>} : vector<1x256xi32>
    %c16_i32 = arith.constant 16 : i32
    %c0_i32 = arith.constant 0 : i32
    %1 = arith.cmpi eq, %c16_i32, %c0_i32 : i32
    %c1_i32 = arith.constant 1 : i32
    %2 = arith.select %1, %c1_i32, %c16_i32 : i32
    %3 = vector.broadcast %2 : i32 to vector<1x256xi32>
    %4 = arith.remsi %0, %3 : vector<1x256xi32>
    %c0_i32_0 = arith.constant 0 : i32
    %5 = vector.broadcast %c0_i32_0 : i32 to vector<1x256xi32>
    %6 = arith.cmpi ne, %4, %5 : vector<1x256xi32>
    %c0_i32_1 = arith.constant 0 : i32
    %7 = vector.broadcast %c0_i32_1 : i32 to vector<1x256xi32>
    %8 = arith.cmpi slt, %4, %7 : vector<1x256xi32>
    %c0_i32_2 = arith.constant 0 : i32
    %9 = arith.cmpi slt, %2, %c0_i32_2 : i32
    %10 = vector.broadcast %9 : i1 to vector<1x256xi1>
    %11 = vector.broadcast %10 : vector<1x256xi1> to vector<1x256xi1>
    %12 = arith.xori %8, %11 : vector<1x256xi1>
    %13 = arith.andi %12, %6 : vector<1x256xi1>
    %14 = vector.broadcast %2 : i32 to vector<1x256xi32>
    %15 = arith.addi %4, %14 : vector<1x256xi32>
    %16 = arith.select %13, %15, %4 : vector<1x256xi1>, vector<1x256xi32>
    %c1_i32_3 = arith.constant 1 : i32
    %17 = vector.broadcast %c1_i32_3 : i32 to vector<1x256xi32>
    %18 = arith.cmpi sge, %16, %17 : vector<1x256xi32>
    %c14_i32 = arith.constant 14 : i32
    %19 = vector.broadcast %c14_i32 : i32 to vector<1x256xi32>
    %20 = arith.cmpi sle, %16, %19 : vector<1x256xi32>
    %c0 = arith.constant 0 : index
    %c0_4 = arith.constant 0 : index
    %c0_5 = arith.constant 0 : index
    %21 = vector.load %arg1[%c0, %c0_4, %c0_5] : memref<1x4x256xf32, #tpu.memory_space<vmem>>, vector<1x4x256xf32>
    %22 = vector.shape_cast %21 : vector<1x4x256xf32> to vector<4x256xf32>
    %cst = arith.constant 0.000000e+00 : f32
    %23 = vector.broadcast %cst : f32 to vector<4x17xf32>
    %24 = vector.extract_strided_slice %22 {offsets = [0, 0], sizes = [4, 239], strides = [1, 1]} : vector<4x256xf32> to vector<4x239xf32>
    %25 = tpu.concatenate %23, %24 in 1 : vector<4x17xf32>, vector<4x239xf32> -> vector<4x256xf32>
    %cst_6 = arith.constant 0.000000e+00 : f32
    %26 = vector.shape_cast %18 : vector<1x256xi1> to vector<1x256xi1>
    %27 = vector.broadcast %26 : vector<1x256xi1> to vector<4x256xi1>
    %28 = vector.broadcast %cst_6 : f32 to vector<4x256xf32>
    %29 = arith.select %27, %25, %28 : vector<4x256xi1>, vector<4x256xf32>
    %cst_7 = arith.constant 0.000000e+00 : f32
    %30 = vector.broadcast %cst_7 : f32 to vector<4x16xf32>
    %31 = vector.extract_strided_slice %22 {offsets = [0, 0], sizes = [4, 240], strides = [1, 1]} : vector<4x256xf32> to vector<4x240xf32>
    %32 = tpu.concatenate %30, %31 in 1 : vector<4x16xf32>, vector<4x240xf32> -> vector<4x256xf32>
    %cst_8 = arith.constant 0.000000e+00 : f32
    %33 = vector.broadcast %cst_8 : f32 to vector<4x15xf32>
    %34 = vector.extract_strided_slice %22 {offsets = [0, 0], sizes = [4, 241], strides = [1, 1]} : vector<4x256xf32> to vector<4x241xf32>
    %35 = tpu.concatenate %33, %34 in 1 : vector<4x15xf32>, vector<4x241xf32> -> vector<4x256xf32>
    %cst_9 = arith.constant 0.000000e+00 : f32
    %36 = vector.shape_cast %20 : vector<1x256xi1> to vector<1x256xi1>
    %37 = vector.broadcast %36 : vector<1x256xi1> to vector<4x256xi1>
    %38 = vector.broadcast %cst_9 : f32 to vector<4x256xf32>
    %39 = arith.select %37, %35, %38 : vector<4x256xi1>, vector<4x256xf32>
    %cst_10 = arith.constant 0.000000e+00 : f32
    %40 = vector.broadcast %cst_10 : f32 to vector<4x1xf32>
    %41 = vector.extract_strided_slice %22 {offsets = [0, 0], sizes = [4, 255], strides = [1, 1]} : vector<4x256xf32> to vector<4x255xf32>
    %42 = tpu.concatenate %40, %41 in 1 : vector<4x1xf32>, vector<4x255xf32> -> vector<4x256xf32>
    %cst_11 = arith.constant 0.000000e+00 : f32
    %43 = vector.shape_cast %18 : vector<1x256xi1> to vector<1x256xi1>
    %44 = vector.broadcast %43 : vector<1x256xi1> to vector<4x256xi1>
    %45 = vector.broadcast %cst_11 : f32 to vector<4x256xf32>
    %46 = arith.select %44, %42, %45 : vector<4x256xi1>, vector<4x256xf32>
    %47 = vector.extract_strided_slice %22 {offsets = [0, 1], sizes = [4, 255], strides = [1, 1]} : vector<4x256xf32> to vector<4x255xf32>
    %cst_12 = arith.constant 0.000000e+00 : f32
    %48 = vector.broadcast %cst_12 : f32 to vector<4x1xf32>
    %49 = tpu.concatenate %47, %48 in 1 : vector<4x255xf32>, vector<4x1xf32> -> vector<4x256xf32>
    %cst_13 = arith.constant 0.000000e+00 : f32
    %50 = vector.shape_cast %20 : vector<1x256xi1> to vector<1x256xi1>
    %51 = vector.broadcast %50 : vector<1x256xi1> to vector<4x256xi1>
    %52 = vector.broadcast %cst_13 : f32 to vector<4x256xf32>
    %53 = arith.select %51, %49, %52 : vector<4x256xi1>, vector<4x256xf32>
    %54 = vector.extract_strided_slice %22 {offsets = [0, 15], sizes = [4, 241], strides = [1, 1]} : vector<4x256xf32> to vector<4x241xf32>
    %cst_14 = arith.constant 0.000000e+00 : f32
    %55 = vector.broadcast %cst_14 : f32 to vector<4x15xf32>
    %56 = tpu.concatenate %54, %55 in 1 : vector<4x241xf32>, vector<4x15xf32> -> vector<4x256xf32>
    %cst_15 = arith.constant 0.000000e+00 : f32
    %57 = vector.shape_cast %18 : vector<1x256xi1> to vector<1x256xi1>
    %58 = vector.broadcast %57 : vector<1x256xi1> to vector<4x256xi1>
    %59 = vector.broadcast %cst_15 : f32 to vector<4x256xf32>
    %60 = arith.select %58, %56, %59 : vector<4x256xi1>, vector<4x256xf32>
    %61 = vector.extract_strided_slice %22 {offsets = [0, 16], sizes = [4, 240], strides = [1, 1]} : vector<4x256xf32> to vector<4x240xf32>
    %cst_16 = arith.constant 0.000000e+00 : f32
    %62 = vector.broadcast %cst_16 : f32 to vector<4x16xf32>
    %63 = tpu.concatenate %61, %62 in 1 : vector<4x240xf32>, vector<4x16xf32> -> vector<4x256xf32>
    %64 = vector.extract_strided_slice %22 {offsets = [0, 17], sizes = [4, 239], strides = [1, 1]} : vector<4x256xf32> to vector<4x239xf32>
    %cst_17 = arith.constant 0.000000e+00 : f32
    %65 = vector.broadcast %cst_17 : f32 to vector<4x17xf32>
    %66 = tpu.concatenate %64, %65 in 1 : vector<4x239xf32>, vector<4x17xf32> -> vector<4x256xf32>
    %cst_18 = arith.constant 0.000000e+00 : f32
    %67 = vector.shape_cast %20 : vector<1x256xi1> to vector<1x256xi1>
    %68 = vector.broadcast %67 : vector<1x256xi1> to vector<4x256xi1>
    %69 = vector.broadcast %cst_18 : f32 to vector<4x256xf32>
    %70 = arith.select %68, %66, %69 : vector<4x256xi1>, vector<4x256xf32>
    %71 = tpu.concatenate %29, %32, %39, %46, %22, %53, %60, %63, %70 in 0 : vector<4x256xf32>, vector<4x256xf32>, vector<4x256xf32>, vector<4x256xf32>, vector<4x256xf32>, vector<4x256xf32>, vector<4x256xf32>, vector<4x256xf32>, vector<4x256xf32> -> vector<36x256xf32>
    %c0_19 = arith.constant 0 : index
    %c0_20 = arith.constant 0 : index
    %72 = vector.load %arg2[%c0_19, %c0_20] : memref<4x36xf32, #tpu.memory_space<vmem>>, vector<4x36xf32>
    %cst_21 = arith.constant dense<0.000000e+00> : vector<4x256xf32>
    %73 = tpu.matmul %72, %71, %cst_21 {dimension_numbers = #tpu.dot_dimension_numbers<[1], [0], [0], [1], [0, 0, 1, 1], [], []>} : vector<4x36xf32>, vector<36x256xf32>, vector<4x256xf32> -> vector<4x256xf32>
    %c0_22 = arith.constant 0 : index
    %c0_23 = arith.constant 0 : index
    %74 = vector.load %arg3[%c0_22, %c0_23] : memref<4x1xf32, #tpu.memory_space<vmem>>, vector<4x1xf32>
    %75 = vector.broadcast %74 : vector<4x1xf32> to vector<4x256xf32>
    %76 = arith.addf %73, %75 : vector<4x256xf32>
    %cst_24 = arith.constant 0.000000e+00 : f32
    %77 = vector.broadcast %cst_24 : f32 to vector<4x256xf32>
    %78 = arith.maximumf %76, %77 : vector<4x256xf32>
    %cst_25 = arith.constant 0.000000e+00 : f32
    %79 = vector.broadcast %cst_25 : f32 to vector<4x17xf32>
    %80 = vector.extract_strided_slice %78 {offsets = [0, 0], sizes = [4, 239], strides = [1, 1]} : vector<4x256xf32> to vector<4x239xf32>
    %81 = tpu.concatenate %79, %80 in 1 : vector<4x17xf32>, vector<4x239xf32> -> vector<4x256xf32>
    %cst_26 = arith.constant 0.000000e+00 : f32
    %82 = vector.shape_cast %18 : vector<1x256xi1> to vector<1x256xi1>
    %83 = vector.broadcast %82 : vector<1x256xi1> to vector<4x256xi1>
    %84 = vector.broadcast %cst_26 : f32 to vector<4x256xf32>
    %85 = arith.select %83, %81, %84 : vector<4x256xi1>, vector<4x256xf32>
    %cst_27 = arith.constant 0.000000e+00 : f32
    %86 = vector.broadcast %cst_27 : f32 to vector<4x16xf32>
    %87 = vector.extract_strided_slice %78 {offsets = [0, 0], sizes = [4, 240], strides = [1, 1]} : vector<4x256xf32> to vector<4x240xf32>
    %88 = tpu.concatenate %86, %87 in 1 : vector<4x16xf32>, vector<4x240xf32> -> vector<4x256xf32>
    %cst_28 = arith.constant 0.000000e+00 : f32
    %89 = vector.broadcast %cst_28 : f32 to vector<4x15xf32>
    %90 = vector.extract_strided_slice %78 {offsets = [0, 0], sizes = [4, 241], strides = [1, 1]} : vector<4x256xf32> to vector<4x241xf32>
    %91 = tpu.concatenate %89, %90 in 1 : vector<4x15xf32>, vector<4x241xf32> -> vector<4x256xf32>
    %cst_29 = arith.constant 0.000000e+00 : f32
    %92 = vector.shape_cast %20 : vector<1x256xi1> to vector<1x256xi1>
    %93 = vector.broadcast %92 : vector<1x256xi1> to vector<4x256xi1>
    %94 = vector.broadcast %cst_29 : f32 to vector<4x256xf32>
    %95 = arith.select %93, %91, %94 : vector<4x256xi1>, vector<4x256xf32>
    %cst_30 = arith.constant 0.000000e+00 : f32
    %96 = vector.broadcast %cst_30 : f32 to vector<4x1xf32>
    %97 = vector.extract_strided_slice %78 {offsets = [0, 0], sizes = [4, 255], strides = [1, 1]} : vector<4x256xf32> to vector<4x255xf32>
    %98 = tpu.concatenate %96, %97 in 1 : vector<4x1xf32>, vector<4x255xf32> -> vector<4x256xf32>
    %cst_31 = arith.constant 0.000000e+00 : f32
    %99 = vector.shape_cast %18 : vector<1x256xi1> to vector<1x256xi1>
    %100 = vector.broadcast %99 : vector<1x256xi1> to vector<4x256xi1>
    %101 = vector.broadcast %cst_31 : f32 to vector<4x256xf32>
    %102 = arith.select %100, %98, %101 : vector<4x256xi1>, vector<4x256xf32>
    %103 = vector.extract_strided_slice %78 {offsets = [0, 1], sizes = [4, 255], strides = [1, 1]} : vector<4x256xf32> to vector<4x255xf32>
    %cst_32 = arith.constant 0.000000e+00 : f32
    %104 = vector.broadcast %cst_32 : f32 to vector<4x1xf32>
    %105 = tpu.concatenate %103, %104 in 1 : vector<4x255xf32>, vector<4x1xf32> -> vector<4x256xf32>
    %cst_33 = arith.constant 0.000000e+00 : f32
    %106 = vector.shape_cast %20 : vector<1x256xi1> to vector<1x256xi1>
    %107 = vector.broadcast %106 : vector<1x256xi1> to vector<4x256xi1>
    %108 = vector.broadcast %cst_33 : f32 to vector<4x256xf32>
    %109 = arith.select %107, %105, %108 : vector<4x256xi1>, vector<4x256xf32>
    %110 = vector.extract_strided_slice %78 {offsets = [0, 15], sizes = [4, 241], strides = [1, 1]} : vector<4x256xf32> to vector<4x241xf32>
    %cst_34 = arith.constant 0.000000e+00 : f32
    %111 = vector.broadcast %cst_34 : f32 to vector<4x15xf32>
    %112 = tpu.concatenate %110, %111 in 1 : vector<4x241xf32>, vector<4x15xf32> -> vector<4x256xf32>
    %cst_35 = arith.constant 0.000000e+00 : f32
    %113 = vector.shape_cast %18 : vector<1x256xi1> to vector<1x256xi1>
    %114 = vector.broadcast %113 : vector<1x256xi1> to vector<4x256xi1>
    %115 = vector.broadcast %cst_35 : f32 to vector<4x256xf32>
    %116 = arith.select %114, %112, %115 : vector<4x256xi1>, vector<4x256xf32>
    %117 = vector.extract_strided_slice %78 {offsets = [0, 16], sizes = [4, 240], strides = [1, 1]} : vector<4x256xf32> to vector<4x240xf32>
    %cst_36 = arith.constant 0.000000e+00 : f32
    %118 = vector.broadcast %cst_36 : f32 to vector<4x16xf32>
    %119 = tpu.concatenate %117, %118 in 1 : vector<4x240xf32>, vector<4x16xf32> -> vector<4x256xf32>
    %120 = vector.extract_strided_slice %78 {offsets = [0, 17], sizes = [4, 239], strides = [1, 1]} : vector<4x256xf32> to vector<4x239xf32>
    %cst_37 = arith.constant 0.000000e+00 : f32
    %121 = vector.broadcast %cst_37 : f32 to vector<4x17xf32>
    %122 = tpu.concatenate %120, %121 in 1 : vector<4x239xf32>, vector<4x17xf32> -> vector<4x256xf32>
    %cst_38 = arith.constant 0.000000e+00 : f32
    %123 = vector.shape_cast %20 : vector<1x256xi1> to vector<1x256xi1>
    %124 = vector.broadcast %123 : vector<1x256xi1> to vector<4x256xi1>
    %125 = vector.broadcast %cst_38 : f32 to vector<4x256xf32>
    %126 = arith.select %124, %122, %125 : vector<4x256xi1>, vector<4x256xf32>
    %127 = tpu.concatenate %85, %88, %95, %102, %78, %109, %116, %119, %126 in 0 : vector<4x256xf32>, vector<4x256xf32>, vector<4x256xf32>, vector<4x256xf32>, vector<4x256xf32>, vector<4x256xf32>, vector<4x256xf32>, vector<4x256xf32>, vector<4x256xf32> -> vector<36x256xf32>
    %c0_39 = arith.constant 0 : index
    %c0_40 = arith.constant 0 : index
    %128 = vector.load %arg4[%c0_39, %c0_40] : memref<4x36xf32, #tpu.memory_space<vmem>>, vector<4x36xf32>
    %cst_41 = arith.constant dense<0.000000e+00> : vector<4x256xf32>
    %129 = tpu.matmul %128, %127, %cst_41 {dimension_numbers = #tpu.dot_dimension_numbers<[1], [0], [0], [1], [0, 0, 1, 1], [], []>} : vector<4x36xf32>, vector<36x256xf32>, vector<4x256xf32> -> vector<4x256xf32>
    %c0_42 = arith.constant 0 : index
    %c0_43 = arith.constant 0 : index
    %130 = vector.load %arg5[%c0_42, %c0_43] : memref<4x1xf32, #tpu.memory_space<vmem>>, vector<4x1xf32>
    %131 = vector.broadcast %130 : vector<4x1xf32> to vector<4x256xf32>
    %132 = arith.addf %129, %131 : vector<4x256xf32>
    %133 = arith.addf %22, %132 : vector<4x256xf32>
    %cst_44 = arith.constant 0.000000e+00 : f32
    %134 = vector.broadcast %cst_44 : f32 to vector<4x256xf32>
    %135 = arith.maximumf %133, %134 : vector<4x256xf32>
    %c0_45 = arith.constant 0 : index
    %c0_46 = arith.constant 0 : index
    %c0_47 = arith.constant 0 : index
    %136 = vector.load %arg6[%c0_45, %c0_46, %c0_47] : memref<1x4x256xf32, #tpu.memory_space<vmem>>, vector<1x4x256xf32>
    %137 = vector.shape_cast %136 : vector<1x4x256xf32> to vector<4x256xf32>
    %138 = vector.shape_cast %135 : vector<4x256xf32> to vector<1x4x256xf32>
    tpu.vector_store %arg6[%c0_45, %c0_46, %c0_47], %138 {strides = array<i32>} : memref<1x4x256xf32, #tpu.memory_space<vmem>>, vector<1x4x256xf32>,
    return
  }
  func.func @transform_0(%arg0: i32) -> (i32, i32, i32) {
    %c0_i32 = arith.constant 0 : i32
    %c0_i32_0 = arith.constant 0 : i32
    %c0_i32_1 = arith.constant 0 : i32
    return %arg0, %c0_i32, %c0_i32_0 : i32, i32, i32
  }
  func.func @transform_1(%arg0: i32) -> (i32, i32) {
    %c0_i32 = arith.constant 0 : i32
    %c0_i32_0 = arith.constant 0 : i32
    %c0_i32_1 = arith.constant 0 : i32
    return %c0_i32, %c0_i32_0 : i32, i32
  }
  func.func @transform_2(%arg0: i32) -> (i32, i32) {
    %c0_i32 = arith.constant 0 : i32
    %c0_i32_0 = arith.constant 0 : i32
    %c0_i32_1 = arith.constant 0 : i32
    return %c0_i32, %c0_i32_0 : i32, i32
  }
  func.func @transform_3(%arg0: i32) -> (i32, i32) {
    %c0_i32 = arith.constant 0 : i32
    %c0_i32_0 = arith.constant 0 : i32
    %c0_i32_1 = arith.constant 0 : i32
    return %c0_i32, %c0_i32_0 : i32, i32
  }
  func.func @transform_4(%arg0: i32) -> (i32, i32) {
    %c0_i32 = arith.constant 0 : i32
    %c0_i32_0 = arith.constant 0 : i32
    %c0_i32_1 = arith.constant 0 : i32
    return %c0_i32, %c0_i32_0 : i32, i32
  }
  func.func @transform_5(%arg0: i32) -> (i32, i32, i32) {
    %c0_i32 = arith.constant 0 : i32
    %c0_i32_0 = arith.constant 0 : i32
    %c0_i32_1 = arith.constant 0 : i32
    return %arg0, %c0_i32, %c0_i32_0 : i32, i32, i32
  }
}

</mosaic_0001>

<bundles_post_ra>
// kernel: tpu_custom_call.1
= control target key start
LH: loop header
LB: loop body
LE: loop exit
PB: predicated region body
PF: predicated region fallthrough
CT: control target
= control target key end

     0   :  { %10 = vsyncpa [#allocation3], 0  ;;  %s1320_s0 = inlined_call_operand.hbm [shape: f32[2,4,256], index: 0, kind: input, shape index: {}]   ;;  %s1321_s1 = inlined_call_operand.vmem [shape: f32[4,36], index: 1, kind: input, shape index: {}]   ;;  %s1322_s2 = inlined_call_operand.vmem [shape: f32[4,1], index: 2, kind: input, shape index: {}]   ;;  %s1323_s3 = inlined_call_operand.vmem [shape: f32[4,36], index: 3, kind: input, shape index: {}]   ;;  %s1324_s4 = inlined_call_operand.vmem [shape: f32[4,1], index: 4, kind: input, shape index: {}]   ;;  %s1325_s5 = inlined_call_operand.hbm [shape: f32[2,4,256], index: 5, kind: output, shape index: {}]  }
   0x1   :  { %12 = vsyncpa [#allocation3 + $0x1], 0 }
   0x2   :  { %13 = vsyncpa [#allocation4], 0 }
   0x3   :  { %15 = vsyncpa [#allocation4 + $0x1], 0  ;;  %s988_s18 = smov 0   ;;  %s990_s19 = smov 0  }
   0x4   :  { %s992_s20 = smov 0   ;;  %s994_s21 = smov 0  }
   0x5 LB: > { %s1009_s22 = sadd.s32 4294967295, %s944_s21   ;;  %s772_s23 = sadd.s32 4294967294, %s944_s21   ;;  %s944_s21 = sphi %s994_s21, %s1350_s21   ;;  %s940_s20 = sphi %s992_s20, %s1349_s20   ;;  %s936_s19 = sphi %s990_s19, %s1348_s19   ;;  %s932_s18 = sphi %s988_s18, %s1347_s18  }
   0x6   : > { %s1013_s24 = sadd.s32 1, %s944_s21   ;;  %s28_s25 = sadd.s32 1, %s940_s20 }
   0x7   : > { %s25_s26 = ssub.s32 %s944_s21, %s1013_s24  ;;  %p35_p0 = scmp.ne.s32.totalorder %s940_s20, %s936_s19 }
   0x8   : > { %p26_p1 = scmp.eq.s32.totalorder %s25_s26, 0  ;;  %p36_p2 = scmp.eq.s32.totalorder %s944_s21, 0 }
   0x9   : > { %p41_p3 = scmp.ne.s32.totalorder %s936_s19, %s932_s18  ;;  %p42_p4 = scmp.eq.s32.totalorder %s1009_s22, 0 }
   0xa   : > { %s1025_s27 = scalar_select %p26_p1, %s940_s20, %s28_s25  }
   0xb   : > { %p1027_p5 = por %p36_p2, %p35_p0  ;;  %p1031_p6 = por %p42_p4, %p41_p3 }
   0xc   : > { %p149_p7 = scmp.eq.s32.totalorder %s1009_s22, 1  ;;  %p155_p8 = scmp.eq.s32.totalorder %s772_s23, 1 }
   0xd   : > { %s1329_s29 = scalar_select %p1031_p6, 1, 0 }
   0xe   : > { %p806_p10 = scmp.lt.s32.totalorder %s944_s21, 2  ;;  %p1038_p11 = por %p149_p7, %p35_p0 }
   0xf   : > { %p1042_p12 = por %p155_p8, %p41_p3  ;;  %s187_s7 = sand.u32 1, %s940_s20  }
  0x10   : > { %s1330_s30 = scalar_select %p1038_p11, 1, 0 }
  0x11   : > { %s1331_s6 = scalar_select %p1042_p12, 1, 0 }
  0x12   : > { %s792_s8 = sshll.u32 %s944_s21, 7  ;;  %s775_s9 = sshll.u32 %s187_s7, 3 }
  0x13   : > { %s1051_s12 = scalar_lea.hbm %s1320_s0, %s792_s8  ;;  %s191_s13 = scalar_lea.vmem [#allocation2], %s775_s9 }
  0x14   : > { %s199_s14 = sshll.u32 %s191_s13, 4  ;;  %p1055_p13 = pnand %p806_p10, %p1027_p5  ;;  %s1059_s14 = int_to_ptr.vmem [resolvable:$true] %s199_s14 }
  0x15   : > { %s188_s16 = scalar_lea.sflag [#allocation3], %s187_s7  ;;  %s852_s17 = scalar_lea.hbm %s1051_s12, 128 }
  0x16   : > { %p853_p2 = scmp.ne.s32.totalorder %s1051_s12, %s852_s17  ;;  %p854_p3 = pneg %p1055_p13 }
  0x17   : > { %s857_s26 = scalar_lea.hbm %s1320_s0, 256  ;;  %p858_p5 = scmp.lt.s32.totalorder %s1051_s12, %s1320_s0 }
  0x18   : > { %p855_p4 = pnand %p854_p3, %p853_p2  ;;  %p859_p8 = scmp.lt.s32.totalorder %s857_s26, %s852_s17 }
  0x1a   : > { %p856_p7 = pneg %p855_p4  ;;  %p860_p10 = por %p859_p8, %p858_p5 }
  0x1c   : > { %p861_p9 = pnand %p860_p10, %p856_p7 }
  0x1e   : > { %864 = shalt.err (!%p861_p9)
}
  0x1f   : > { %s865_s7 = scalar_lea.vmem %s1059_s14, 128  ;;  %s946_s9 = smov [#allocation2]  }
  0x20   : > { %p866_p0 = scmp.ne.s32.totalorder %s1059_s14, %s865_s7  ;;  %s870_s10 = sshll.u32 %s946_s9, 4  ;;  %s871_s10 = int_to_ptr.vmem [resolvable:$false] %s870_s10 }
  0x21   : > { %s872_s11 = scalar_lea.vmem %s871_s10, 256  ;;  %p873_p4 = scmp.lt.s32.totalorder %s1059_s14, %s871_s10 }
  0x22   : > { %p868_p1 = pnand %p866_p0, %p854_p3  ;;  %p874_p12 = scmp.lt.s32.totalorder %s872_s11, %s865_s7 }
  0x24   : > { %p869_p2 = pneg %p868_p1  ;;  %p875_p11 = por %p874_p12, %p873_p4 }
  0x26   : > { %p876_p6 = pnand %p875_p11, %p869_p2 }
  0x28   : > { %879 = shalt.err (!%p876_p6)
}
  0x29   : > { %801 = dma.hbm_to_vmem [thread:$0]  (!%p1055_p13), %s1051_s12, 128, %s1059_s14, %s188_s16  }
  0x2a   : > { %p1333_p9 = scmp.lt.s32.totalorder %s944_s21, 3  ;;  %p1334_p7 = scmp.ge.s32.totalorder %s944_s21, 1 }
  0x2c   : > { %p205_p0 = pnand %p1334_p7, %p1333_p9 }
  0x2d   : > { %s1086_s13 = sand.u32 (!%p205_p0), 1, %s936_s19   ;;  %p1335_p6 = scmp.ne.s32.totalorder (!%p205_p0), %s1329_s29, 0 }
  0x2e   : > { %208 = sbr.rel (%p205_p0) target bundleno = 766 (0x2fe), region = 40  ;;  %s779_s17 = sshll.u32 (!%p205_p0), %s1086_s13, 3 }
  0x2f   : > { %s211_s23 = scalar_lea.sflag (!%p205_p0), [#allocation3], %s1086_s13  ;;  %s214_s15 = scalar_lea.vmem (!%p205_p0), [#allocation2], %s779_s17 }
  0x33   : > { %923 = dma.done.wait (%p1335_p6), %s211_s23, 128  }
  0x34   : > { %925 = vsyncadd (%p1335_p6), %s211_s23, 4294967168  ;;  %v1096_v0 = vld [vmem:[%s214_s15] sm:$0xff]  ;;  %s947_s12 = smov 111   ;;  %s948_s14 = smov 112   ;;  %v952_v2 = vmov 0.0   ;;  %v954_v3 = vmov 0   ;;  %v241_v5 = vlaneseq }
  0x35   : > { %354 = vrot.lane.b32.xlu1 %v1096_v0, %s947_s12  ;;  %346 = vrot.lane.b32.xlu0 %v1096_v0, %s948_s14  ;;  %v1104_v1 = vcombine.high %v1096_v0, %v1096_v0  ;;  %s949_s16 = smov 127   ;;  %s950_s29 = smov 113   ;;  %v398_v4 = vld [vmem:[%s1322_s2] sm:$0xf]  ;;  %vm328_vm0 = vcmask 1039360   ;;  %vm350_vm1 = vcmask 916480  }
  0x36   : > { %s951_s25 = smov 1   ;;  %478 = vmatprep.mubr.f32.mxu0 %v952_v2  ;;  %673 = vmatprep.mubr.f32.mxu1 %v952_v2  ;;  %s953_s26 = smov 15   ;;  %v242_v6 = vand.u32 127, %v241_v5  ;;  %vm339_vm3 = vcmask 924672   ;;  %vm358_vm4 = vcmask 908288   ;;  %vm388_vm7 = vcmask 1043456  }
  0x37   : > { %850 = vset.pattern.permute.xlu0 %v954_v3  ;;  %s955_s28 = smov 16   ;;  %s956_s8 = smov 17   ;;  %vm317_vm9 = vcmask 7168   ;;  %vm302_vm10 = vcmask 121856   ;;  %vm294_vm11 = vcmask 130048   ;;  %vm279_vm12 = vcmask 138240  }
  0x38   : > { %v243_v7 = vadd.s32 128, %v242_v6  ;;  %v248_v11 = vand.u32 15, %v242_v6  ;;  %vm404_vm13 = vcmask 293888   ;;  %s688_s7 = scalar_lea.sflag [#allocation4], %s1086_s13  ;;  %p1344_p12 = scmp.ne.s32.totalorder %s1330_s30, 0 }
  0x39   : > { %326 = vrot.lane.b32.xlu1 %v1104_v1, %s949_s16  ;;  %348 = vrot.lane.b32.xlu0 %v1104_v1, %s948_s14  ;;  %s957_s10 = smov [#allocation5]  }
  0x3a   : > { %v255_v10 = vand.u32 15, %v243_v7  ;;  %vm1147_vm6 = vcmp.le.s32.totalorder %v248_v11, 14  ;;  %vm1164_vm8 = vcmp.ge.s32.totalorder %v248_v11, 1  ;;  %v397_v11 = vld [vmem:[%s1321_s1] sm:$0xf] }
  0x3c   : > { %vm1137_vm2 = vcmp.le.s32.totalorder %v255_v10, 14  ;;  %vm1143_vm5 = vcmp.ge.s32.totalorder %v255_v10, 1 }
  0x3d   : > { %337 = vrot.lane.b32.xlu1 %v1104_v1, %s950_s29  ;;  %356 = vrot.lane.b32.xlu0 %v1104_v1, %s947_s12 }
  0x41   : > { %335 = vrot.lane.b32.xlu1 %v1096_v0, %s950_s29  ;;  %324 = vrot.lane.b32.xlu0 %v1096_v0, %s949_s16 }
  0x45   : > { %315 = vrot.lane.b32.xlu1 %v1104_v1, %s951_s25  ;;  %313 = vrot.lane.b32.xlu0 %v1096_v0, %s951_s25 }
  0x49   : > { %300 = vrot.lane.b32.xlu1 %v1104_v1, %s953_s26  ;;  %298 = vrot.lane.b32.xlu0 %v1096_v0, %s953_s26 }
  0x4d   : > { %292 = vrot.lane.b32.xlu1 %v1104_v1, %s955_s28  ;;  %290 = vrot.lane.b32.xlu0 %v1096_v0, %s955_s28 }
  0x51   : > { %277 = vrot.lane.b32.xlu1 %v1104_v1, %s956_s8  ;;  %275 = vrot.lane.b32.xlu0 %v1096_v0, %s956_s8 }
  0x55   : > { %401 = vperm.xlu0 %850, %v398_v4  }
  0xa7   : > { %v355_v8 = vpop.permute.xlu1 %354  ;;  %v347_v9 = vpop.permute.xlu0 %346 }
  0xab   : > { %v327_v12 = vpop.permute.xlu1 %326  ;;  %v349_v13 = vpop.permute.xlu0 %348 }
  0xac   : > { %v332_v15 = vsel %vm328_vm0, %v327_v12, 0.0  ;;  %v353_v16 = vsel %vm350_vm1, %v349_v13, 0.0  ;;  %v351_v26 = vsel %vm350_vm1, %v347_v9, %v349_v13 }
  0xad   : > { %v334_v19 = vsel %vm1137_vm2, %v332_v15, 0.0  ;;  %v385_v22 = vrot.slane %v353_v16, 4  ;;  %v384_v35 = vrot.slane %v351_v26, 4 }
  0xae   : > { %v380_v32 = vrot.slane %v334_v19, 4 }
  0xaf   : > { %v338_v20 = vpop.permute.xlu1 %337  ;;  %v357_v21 = vpop.permute.xlu0 %356 }
  0xb0   : > { %v343_v23 = vsel %vm339_vm3, %v338_v20, 0.0  ;;  %v359_v24 = vsel %vm358_vm4, %v355_v8, %v357_v21  ;;  %v362_v25 = vsel %vm358_vm4, %v357_v21, 0.0  ;;  %v394_v44 = vsel %vm388_vm7, %v1104_v1, %v380_v32 }
  0xb1   : > { %v345_v27 = vsel %vm1143_vm5, %v343_v23, 0.0  ;;  %v364_v28 = vsel %vm1137_vm2, %v362_v25, 0.0  ;;  %v363_v29 = vsel %vm1147_vm6, %v359_v24, 0.0 }
  0xb2   : > { %781 = vmatprep.subr.msk.mxu0 %vm388_vm7, %v364_v28  ;;  %v396_v31 = vsel %vm388_vm7, %v345_v27, %v385_v22  ;;  %v594_v22 = vld [vmem:[%s1324_s4] sm:$0xf] }
  0xb3   : > { %v336_v33 = vpop.permute.xlu1 %335  ;;  %782 = vmatpush1.msk.msra.mxu0 %vm388_vm7, %v363_v29  ;;  %v325_v34 = vpop.permute.xlu0 %324 }
  0xb4   : > { %v340_v36 = vsel %vm339_vm3, %v336_v33, %v338_v20  ;;  %v329_v37 = vsel %vm328_vm0, %v325_v34, %v327_v12  ;;  %438 = vmatprep.subr.mxu0 %v396_v31 }
  0xb5   : > { %v344_v38 = vsel %vm1164_vm8, %v340_v36, 0.0  ;;  %v333_v39 = vsel %vm1147_vm6, %v329_v37, 0.0 }
  0xb6   : > { %v379_v40 = vrot.slane %v333_v39, 4  ;;  %v395_v41 = vsel %vm388_vm7, %v344_v38, %v384_v35 }
  0xb7   : > { %v316_v42 = vpop.permute.xlu1 %315  ;;  %439 = vmatpush1.msra.mxu0 %v395_v41  ;;  %v314_v43 = vpop.permute.xlu0 %313 }
  0xb8   : > { %v318_v45 = vsel %vm317_vm9, %v314_v43, %v316_v42  ;;  %v321_v46 = vsel %vm317_vm9, 0.0, %v314_v43  ;;  %440 = vmatprep.subr.mxu0 %v394_v44  ;;  %v393_v47 = vsel %vm388_vm7, %v1096_v0, %v379_v40 }
  0xb9   : > { %v322_v48 = vsel %vm1164_vm8, %v321_v46, 0.0  ;;  %v323_v49 = vsel %vm1143_vm5, %v318_v45, 0.0  ;;  %441 = vmatpush1.msra.mxu0 %v393_v47 }
  0xba   : > { %v372_v52 = vrot.slane %v322_v48, 4  ;;  %v373_v53 = vrot.slane %v323_v49, 4 }
  0xbb   : > { %v301_v50 = vpop.permute.xlu1 %300  ;;  %v299_v51 = vpop.permute.xlu0 %298 }
  0xbc   : > { %v303_v54 = vsel %vm302_vm10, %v299_v51, %v301_v50  ;;  %v306_v55 = vsel %vm302_vm10, 0.0, %v299_v51 }
  0xbd   : > { %v311_v56 = vsel %vm1147_vm6, %v306_v55, 0.0  ;;  %v312_v57 = vsel %vm1137_vm2, %v303_v54, 0.0 }
  0xbe   : > { %v392_v58 = vsel %vm388_vm7, %v312_v57, %v373_v53  ;;  %v391_v59 = vsel %vm388_vm7, %v311_v56, %v372_v52 }
  0xbf   : > { %v293_v60 = vpop.permute.xlu1 %292  ;;  %442 = vmatprep.subr.mxu0 %v392_v58  ;;  %v291_v61 = vpop.permute.xlu0 %290 }
  0xc0   : > { %443 = vmatpush1.msra.mxu0 %v391_v59  ;;  %v295_v62 = vsel %vm294_vm11, %v291_v61, %v293_v60  ;;  %v297_v63 = vsel %vm294_vm11, 0.0, %v291_v61 }
  0xc1   : > { %v366_v3 = vrot.slane %v297_v63, 4  ;;  %v367_v4 = vrot.slane %v295_v62, 4 }
  0xc3   : > { %v278_v1 = vpop.permute.xlu1 %277  ;;  %v276_v2 = vpop.permute.xlu0 %275 }
  0xc4   : > { %v280_v5 = vsel %vm279_vm12, %v276_v2, %v278_v1  ;;  %v283_v6 = vsel %vm279_vm12, 0.0, %v276_v2 }
  0xc5   : > { %v288_v7 = vsel %vm1164_vm8, %v283_v6, 0.0  ;;  %v289_v8 = vsel %vm1143_vm5, %v280_v5, 0.0 }
  0xc6   : > { %v390_v9 = vsel %vm388_vm7, %v289_v8, %v367_v4  ;;  %v389_v10 = vsel %vm388_vm7, %v288_v7, %v366_v3 }
  0xc7   : > { %444 = vmatprep.subr.mxu0 %v390_v9 }
  0xc8   : > { %445 = vmatpush1.msra.mxu0 %v389_v10 }
  0xc9   : > { %783 = vmatmul.mubr.msk.f32.vlgmr.msra.gmra.mxu0 %vm404_vm13, %v397_v11 }
  0xd0   : > { %v402_v12 = vpop.permute.xlu0 %401 }
 0x189   : > { %v480_v13 = vpop.f32.mrf.mxu0 }
 0x18a   : > { %v481_v15 = vadd.f32 %v480_v13, %v402_v12 }
 0x18b   : > { %v482_v19 = vpop.f32.mrf.mxu0 }
 0x18c   : > { %v485_v16 = vmax.f32 %v481_v15, 0.0  ;;  %v483_v20 = vadd.f32 %v482_v19, %v402_v12 }
 0x18e   : > { %553 = vrot.lane.b32.xlu1 %v485_v16, %s947_s12  ;;  %546 = vrot.lane.b32.xlu0 %v485_v16, %s948_s14  ;;  %v486_v21 = vmax.f32 %v483_v20, 0.0 }
 0x192   : > { %536 = vrot.lane.b32.xlu1 %v485_v16, %s950_s29  ;;  %526 = vrot.lane.b32.xlu0 %v485_v16, %s949_s16 }
 0x196   : > { %548 = vrot.lane.b32.xlu1 %v486_v21, %s948_s14  ;;  %516 = vrot.lane.b32.xlu0 %v485_v16, %s951_s25 }
 0x19a   : > { %555 = vrot.lane.b32.xlu1 %v486_v21, %s947_s12  ;;  %506 = vrot.lane.b32.xlu0 %v485_v16, %s953_s26 }
 0x19e   : > { %538 = vrot.lane.b32.xlu1 %v486_v21, %s950_s29  ;;  %528 = vrot.lane.b32.xlu0 %v486_v21, %s949_s16  ;;  %s793_s16 = sshll.u32 %s1009_s22, 7  ;;  %s240_s29 = scalar_lea.vmem [#allocation5], %s779_s17 }
 0x19f   : > { %s884_s22 = sshll.u32 %s957_s10, 4  ;;  %s885_s22 = int_to_ptr.vmem [resolvable:$false] %s884_s22 }
 0x1a0   : > { %s886_s17 = scalar_lea.vmem %s885_s22, 256 }
 0x1a2   : > { %518 = vrot.lane.b32.xlu1 %v486_v21, %s951_s25  ;;  %499 = vrot.lane.b32.xlu0 %v485_v16, %s955_s28  ;;  %s702_s25 = sshll.u32 %s240_s29, 4  ;;  %s703_s25 = int_to_ptr.vmem [resolvable:$true] %s702_s25 }
 0x1a3   : > { %s880_s9 = scalar_lea.vmem %s703_s25, 128  ;;  %p887_p3 = scmp.lt.s32.totalorder %s703_s25, %s885_s22 }
 0x1a4   : > { %p881_p11 = scmp.ne.s32.totalorder %s703_s25, %s880_s9  ;;  %p888_p5 = scmp.lt.s32.totalorder %s886_s17, %s880_s9 }
 0x1a6   : > { %508 = vrot.lane.b32.xlu1 %v486_v21, %s953_s26  ;;  %489 = vrot.lane.b32.xlu0 %v485_v16, %s956_s8  ;;  %p882_p13 = pnand %p881_p11, %p1344_p12  ;;  %p889_p8 = por %p888_p5, %p887_p3 }
 0x1a8   : > { %p883_p1 = pneg %p882_p13 }
 0x1aa   : > { %501 = vrot.lane.b32.xlu1 %v486_v21, %s955_s28  ;;  %597 = vperm.xlu0 %850, %v594_v22   ;;  %p890_p10 = pnand %p889_p8, %p883_p1 }
 0x1ae   : > { %491 = vrot.lane.b32.xlu1 %v486_v21, %s956_s8  ;;  %s700_s8 = scalar_lea.hbm %s1325_s5, %s793_s16 }
 0x200   : > { %v554_v23 = vpop.permute.xlu1 %553  ;;  %v547_v24 = vpop.permute.xlu0 %546 }
 0x204   : > { %v537_v25 = vpop.permute.xlu1 %536  ;;  %v527_v26 = vpop.permute.xlu0 %526 }
 0x208   : > { %v549_v27 = vpop.permute.xlu1 %548  ;;  %v517_v28 = vpop.permute.xlu0 %516 }
 0x209   : > { %v550_v32 = vsel %vm350_vm1, %v547_v24, %v549_v27  ;;  %v552_v33 = vsel %vm350_vm1, %v549_v27, 0.0  ;;  %v523_v54 = vsel %vm317_vm9, 0.0, %v517_v28 }
 0x20a   : > { %v581_v38 = vrot.slane %v550_v32, 4  ;;  %v582_v39 = vrot.slane %v552_v33, 4  ;;  %v524_v62 = vsel %vm1164_vm8, %v523_v54, 0.0 }
 0x20b   : > { %v570_v4 = vrot.slane %v524_v62, 4 }
 0x20c   : > { %v556_v29 = vpop.permute.xlu1 %555  ;;  %v507_v31 = vpop.permute.xlu0 %506 }
 0x20d   : > { %v557_v34 = vsel %vm358_vm4, %v554_v23, %v556_v29  ;;  %v560_v35 = vsel %vm358_vm4, %v556_v29, 0.0  ;;  %v513_v60 = vsel %vm302_vm10, 0.0, %v507_v31 }
 0x20e   : > { %v562_v36 = vsel %vm1137_vm2, %v560_v35, 0.0  ;;  %v561_v37 = vsel %vm1147_vm6, %v557_v34, 0.0  ;;  %v514_v1 = vsel %vm1147_vm6, %v513_v60, 0.0 }
 0x20f   : > { %784 = vmatprep.subr.msk.mxu1 %vm388_vm7, %v562_v36  ;;  %v587_v9 = vsel %vm388_vm7, %v514_v1, %v570_v4 }
 0x210   : > { %785 = vmatpush1.msk.msra.mxu1 %vm388_vm7, %v561_v37  ;;  %v539_v40 = vpop.permute.xlu1 %538  ;;  %v529_v41 = vpop.permute.xlu0 %528 }
 0x211   : > { %v540_v42 = vsel %vm339_vm3, %v537_v25, %v539_v40  ;;  %v543_v43 = vsel %vm339_vm3, %v539_v40, 0.0  ;;  %v530_v44 = vsel %vm328_vm0, %v527_v26, %v529_v41  ;;  %v533_v45 = vsel %vm328_vm0, %v529_v41, 0.0 }
 0x212   : > { %v544_v46 = vsel %vm1164_vm8, %v540_v42, 0.0  ;;  %v545_v47 = vsel %vm1143_vm5, %v543_v43, 0.0  ;;  %v534_v48 = vsel %vm1147_vm6, %v530_v44, 0.0  ;;  %v535_v49 = vsel %vm1137_vm2, %v533_v45, 0.0 }
 0x213   : > { %v576_v50 = vrot.slane %v534_v48, 4  ;;  %v577_v51 = vrot.slane %v535_v49, 4  ;;  %v592_v52 = vsel %vm388_vm7, %v545_v47, %v582_v39  ;;  %v591_v53 = vsel %vm388_vm7, %v544_v46, %v581_v38 }
 0x214   : > { %633 = vmatprep.subr.mxu1 %v592_v52  ;;  %v519_v55 = vpop.permute.xlu1 %518  ;;  %v500_v57 = vpop.permute.xlu0 %499 }
 0x215   : > { %v520_v56 = vsel %vm317_vm9, %v517_v28, %v519_v55  ;;  %634 = vmatpush1.msra.mxu1 %v591_v53  ;;  %v590_v58 = vsel %vm388_vm7, %v486_v21, %v577_v51  ;;  %v589_v59 = vsel %vm388_vm7, %v485_v16, %v576_v50  ;;  %v505_v11 = vsel %vm294_vm11, 0.0, %v500_v57  ;;  %v593_v21 = vld [vmem:[%s1323_s3] sm:$0xf] }
 0x216   : > { %v525_v61 = vsel %vm1143_vm5, %v520_v56, 0.0  ;;  %635 = vmatprep.subr.mxu1 %v590_v58  ;;  %v564_v16 = vrot.slane %v505_v11, 4 }
 0x217   : > { %636 = vmatpush1.msra.mxu1 %v589_v59  ;;  %v571_v2 = vrot.slane %v525_v61, 4 }
 0x218   : > { %v509_v63 = vpop.permute.xlu1 %508  ;;  %v490_v6 = vpop.permute.xlu0 %489 }
 0x219   : > { %v510_v3 = vsel %vm302_vm10, %v507_v31, %v509_v63  ;;  %v496_v10 = vsel %vm279_vm12, 0.0, %v490_v6 }
 0x21a   : > { %v515_v5 = vsel %vm1137_vm2, %v510_v3, 0.0  ;;  %v497_v13 = vsel %vm1164_vm8, %v496_v10, 0.0 }
 0x21b   : > { %v588_v7 = vsel %vm388_vm7, %v515_v5, %v571_v2  ;;  %v585_v22 = vsel %vm388_vm7, %v497_v13, %v564_v16 }
 0x21c   : > { %v502_v8 = vpop.permute.xlu1 %501  ;;  %637 = vmatprep.subr.mxu1 %v588_v7 }
 0x21d   : > { %638 = vmatpush1.msra.mxu1 %v587_v9  ;;  %v503_v18 = vsel %vm294_vm11, %v500_v57, %v502_v8 }
 0x21e   : > { %v565_v14 = vrot.slane %v503_v18, 4 }
 0x220   : > { %v492_v12 = vpop.permute.xlu1 %491 }
 0x221   : > { %v493_v15 = vsel %vm279_vm12, %v490_v6, %v492_v12 }
 0x222   : > { %v498_v19 = vsel %vm1143_vm5, %v493_v15, 0.0 }
 0x223   : > { %v586_v20 = vsel %vm388_vm7, %v498_v19, %v565_v14 }
 0x224   : > { %639 = vmatprep.subr.mxu1 %v586_v20 }
 0x225   : > { %640 = vmatpush1.msra.mxu1 %v585_v22  ;;  %v598_v23 = vpop.permute.xlu0 %597 }
 0x226   : > { %786 = vmatmul.mubr.msk.f32.vlgmr.msra.gmra.mxu1 %vm404_vm13, %v593_v21 }
 0x2e6   : > { %v675_v30 = vpop.f32.mrf.mxu1 }
 0x2e7   : > { %v676_v25 = vadd.f32 %v675_v30, %v598_v23 }
 0x2e8   : > { %v677_v24 = vpop.f32.mrf.mxu1 }
 0x2e9   : > { %v678_v17 = vadd.f32 %v677_v24, %v598_v23 }
 0x2eb   : > { %v682_v26 = vcombine.low %v676_v25, %v678_v17 }
 0x2ed   : > { %v684_v27 = vadd.f32 %v682_v26, %v1096_v0 }
 0x2ef   : > { %v685_v28 = vmax.f32 %v684_v27, 0.0 }
 0x2f1   : > { %686 = vst [vmem:[%s240_s29] sm:$0xff] %v685_v28 }
 0x2f2   : > { %893 = shalt.err (!%p890_p10)
}
 0x2f3   : > { %s894_s11 = scalar_lea.hbm %s700_s8, 128  ;;  %s898_s15 = scalar_lea.hbm %s1325_s5, 256 }
 0x2f4   : > { %p895_p2 = scmp.ne.s32.totalorder %s700_s8, %s894_s11  ;;  %p899_p7 = scmp.lt.s32.totalorder %s700_s8, %s1325_s5 }
 0x2f5   : > { %p900_p0 = scmp.lt.s32.totalorder %s898_s15, %s894_s11 }
 0x2f6   : > { %p896_p4 = pnand %p895_p2, %p1344_p12 }
 0x2f7   : > { %p901_p6 = por %p900_p0, %p899_p7 }
 0x2f8   : > { %p897_p9 = pneg %p896_p4 }
 0x2fa   : > { %p902_p11 = pnand %p901_p6, %p897_p9 }
 0x2fc   : > { %905 = shalt.err (!%p902_p11)
}
 0x2fd   : > { %796 = dma.vmem_to_hbm [thread:$0]  (%p1344_p12), %s703_s25, 128, %s700_s8, %s688_s7  }
 0x2fe PF: > { %s714_s16 = sand.u32 1, %s932_s18   ;;  %p1345_p13 = scmp.ne.s32.totalorder %s1331_s6, 0 }
 0x2ff   : > { %p1346_p1 = scmp.ge.s32.totalorder %s944_s21, 2  ;;  %s715_s29 = scalar_lea.sflag [#allocation4], %s714_s16 }
 0x301   : > { %p803_p3 = pnand %p1346_p1, %p1345_p13 }
 0x303   : > { %p804_p5 = pneg %p803_p3 }
 0x305   : > { %927 = dma.done.wait (%p804_p5), %s715_s29, 128  }
 0x306   : > { %929 = vsyncadd (%p804_p5), %s715_s29, 4294967168  ;;  %p18_p8 = scmp.ge.s32.totalorder %s1013_s24, 4   ;;  %s1347_s18 = smov %s936_s19 }
 0x307   : > { %s1348_s19 = smov %s940_s20  ;;  %s1349_s20 = smov %s1025_s27 }
 0x308   : > { %s1350_s21 = smov %s1013_s24  ;;  %20 = sbr.rel (!%p18_p8) target bundleno = 5 (0x5), region = 85 }
 0x30d   :  { %720 = vsyncpa [#allocation3], 1 }
 0x30e   :  { %722 = vsyncpa [#allocation3 + $0x1], 1 }
 0x30f   :  { %723 = vsyncpa [#allocation4], 1 }
 0x310   :  { %725 = vsyncpa [#allocation4 + $0x1], 1 }

</bundles_post_ra>
